<compile_context>
chip_gen: v7x
topology: tpu7x:2x2x1
jax: 0.10.0
libtpu: 0.0.40
codegen_flags: <defaults>
</compile_context>

<pallas_src>
import numpy as np
import jax
import jax.numpy as jnp
from jax import lax
from jax.experimental import pallas as pl
from jax.experimental.pallas import tpu as pltpu


def _vmem_limit_bytes():
    # v7x: 64 MiB physical VMEM per TensorCore -> keep headroom.
    # v5e / v6e: 128 MiB physical -> allow larger tiles.
    try:
        kind = jax.devices()[0].device_kind.lower()
    except Exception:
        kind = ""
    if "v5" in kind or "v6" in kind:
        return 64 * 1024 * 1024
    return 48 * 1024 * 1024


def _cparams(n_axes):
    return pltpu.CompilerParams(
        dimension_semantics=tuple("parallel" for _ in range(n_axes)),
        vmem_limit_bytes=_vmem_limit_bytes(),
    )


# ----------------------------------------------------------------------------
# Pallas kernel 1: coarse sem-seg head = 1x1 conv, (C, HW) layout.
#   out_tile (C, T) = W^T (C, Cf) @ x_tile (Cf, T) + b (C, 1)
# ----------------------------------------------------------------------------
def _conv1x1_kernel(x_ref, wt_ref, b_ref, o_ref):
    o_ref[0] = jnp.dot(wt_ref[...], x_ref[0],
                       preferred_element_type=jnp.float32) + b_ref[...]


def coarse_head_conv1x1(x_nchw, w, b, *, tile_hw=2048):
    """x_nchw: (N, Cf, H, W), w: (Cf, C), b: (C,) -> (N, C, H, W) float32."""
    n, cf, h, wd = x_nchw.shape
    c = w.shape[1]
    hw = h * wd
    t = hw if hw <= tile_hw else (tile_hw // 128) * 128   # lane tile
    grid = (n, pl.cdiv(hw, t))
    x2 = x_nchw.reshape(n, cf, hw).astype(jnp.bfloat16)
    wt = jnp.transpose(w).astype(jnp.bfloat16)            # (C, Cf)
    bb = b.reshape(c, 1).astype(jnp.float32)
    # TODO(synk): optionally fuse this conv into the first upsample step to
    # avoid one full write+read of the coarse logits.
    out = pl.pallas_call(
        _conv1x1_kernel,
        out_shape=jax.ShapeDtypeStruct((n, c, hw), jnp.float32),
        grid=grid,
        in_specs=[
            pl.BlockSpec((1, cf, t), lambda i, j: (i, 0, j)),
            pl.BlockSpec((c, cf), lambda i, j: (0, 0)),
            pl.BlockSpec((c, 1), lambda i, j: (0, 0)),
        ],
        out_specs=pl.BlockSpec((1, c, t), lambda i, j: (i, 0, j)),
        compiler_params=_cparams(2),
    )(x2, wt, bb)
    return out.reshape(n, c, h, wd)


# ----------------------------------------------------------------------------
# Pallas kernel 2: fused 2x bilinear upsample (align_corners=False) + top-2
# uncertainty, ROW-TILED.  Each grid step (n, r) consumes `row_tile` input
# rows (plus a 1-row halo from clamped prev/next blocks) and produces
# 2*row_tile output rows.  H-direction halo rows enter through dedicated
# 0.25-weight rank-1 terms; W-direction uses a bf16 (W, 2W) matrix; the
# running max / second-max over channels is carried through a fori_loop so
# the upsampled logits are never re-read from HBM.
# ----------------------------------------------------------------------------
def _upsample_w_matrix(in_size):
    """(2*in_size, in_size) bilinear interpolation matrix, align_corners=False."""
    out_size = 2 * in_size
    m = np.zeros((out_size, in_size), np.float32)
    for o in range(out_size):
        src = (o + 0.5) / 2.0 - 0.5
        i0 = int(np.floor(src))
        frac = src - i0
        m[o, min(max(i0, 0), in_size - 1)] += 1.0 - frac
        m[o, min(max(i0 + 1, 0), in_size - 1)] += frac
    return m


def _upsample_h_block_matrix(rin):
    """Block-local (2*rin, rin+2) H-upsample matrix over [row_above | rows | row_below]."""
    m = np.zeros((2 * rin, rin + 2), np.float32)
    for j in range(rin):
        m[2 * j, j] += 0.25
        m[2 * j, j + 1] += 0.75
        m[2 * j + 1, j + 1] += 0.75
        m[2 * j + 1, j + 2] += 0.25
    return m


def _upsample_uncertainty_kernel(xc_ref, xp_ref, xn_ref, ah_ref, awt_ref,
                                 up_ref, unc_ref):
    r = pl.program_id(1)
    nrb = pl.num_programs(1)
    c = xc_ref.shape[1]
    rin = xc_ref.shape[2]

    ah = ah_ref[...]                                  # (2*rin, rin+2) bf16
    ah_mid = ah[:, 1:rin + 1]                         # (2*rin, rin)   bf16
    ah_top = ah[:, 0:1].astype(jnp.float32)           # (2*rin, 1)
    ah_bot = ah[:, rin + 1:rin + 2].astype(jnp.float32)
    awt = awt_ref[...]                                # (W, 2W) bf16

    # TODO(synk): on v5e, a 2-tap VPU/roll formulation (weights {0.25, 0.75})
    # would avoid the O(W)-fold dense-matrix FLOP waste; kept as matmuls here.
    def body(ch, carry):
        m1, m2 = carry
        cur = xc_ref[0, ch]                           # (rin, W) f32
        xp = xp_ref[0, ch]                            # prev row-block (clamped)
        xn = xn_ref[0, ch]                            # next row-block (clamped)
        top = jnp.where(r == 0, xp[0:1, :], xp[rin - 1:rin, :])        # clamp top
        bot = jnp.where(r == nrb - 1, xn[rin - 1:rin, :], xn[0:1, :])  # clamp bottom
        t = (jnp.dot(ah_mid, cur.astype(jnp.bfloat16),
                     preferred_element_type=jnp.float32)
             + ah_top * top + ah_bot * bot)           # (2*rin, W) f32
        v = jnp.dot(t.astype(jnp.bfloat16), awt,
                    preferred_element_type=jnp.float32)                # (2*rin, 2W)
        up_ref[0, ch] = v
        m2 = jnp.maximum(m2, jnp.minimum(m1, v))      # ties at max -> uncertainty 0
        m1 = jnp.maximum(m1, v)
        return m1, m2

    neg = jnp.full((up_ref.shape[2], up_ref.shape[3]), -jnp.inf, jnp.float32)
    m1, m2 = lax.fori_loop(0, c, body, (neg, neg))
    unc_ref[0, 0] = m2 - m1                           # (second - first) <= 0


def _pick_row_tile(h, target):
    cands = [rt for rt in range(8, h + 1, 8) if h % rt == 0 and rt <= target]
    return max(cands) if cands else h


def upsample2x_and_uncertainty(logits, *, row_tile=64):
    """logits (N, C, H, W) -> (upsampled (N, C, 2H, 2W), uncertainty (N, 1, 2H, 2W))."""
    n, c, h, w = logits.shape
    assert c >= 2, "top-2 uncertainty requires at least 2 classes"
    rin = _pick_row_tile(h, row_tile)
    nrb = h // rin
    ah = jnp.asarray(_upsample_h_block_matrix(rin), jnp.bfloat16)
    awt = jnp.asarray(_upsample_w_matrix(w).T, jnp.bfloat16)           # (W, 2W)
    up, unc = pl.pallas_call(
        _upsample_uncertainty_kernel,
        out_shape=(
            jax.ShapeDtypeStruct((n, c, 2 * h, 2 * w), jnp.float32),
            jax.ShapeDtypeStruct((n, 1, 2 * h, 2 * w), jnp.float32),
        ),
        grid=(n, nrb),
        in_specs=[
            pl.BlockSpec((1, c, rin, w), lambda i, r: (i, 0, r, 0)),
            pl.BlockSpec((1, c, rin, w),
                         lambda i, r: (i, 0, jnp.maximum(r - 1, 0), 0)),
            pl.BlockSpec((1, c, rin, w),
                         lambda i, r: (i, 0, jnp.minimum(r + 1, nrb - 1), 0)),
            pl.BlockSpec((2 * rin, rin + 2), lambda i, r: (0, 0)),
            pl.BlockSpec((w, 2 * w), lambda i, r: (0, 0)),
        ],
        out_specs=(
            pl.BlockSpec((1, c, 2 * rin, 2 * w), lambda i, r: (i, 0, r, 0)),
            pl.BlockSpec((1, 1, 2 * rin, 2 * w), lambda i, r: (i, 0, r, 0)),
        ),
        compiler_params=_cparams(2),
    )(logits, logits, logits, ah, awt)
    return up, unc


# ----------------------------------------------------------------------------
# Pallas kernel 3: StandardPointHead MLP (num_fc=2, coarse_pred_each_layer=True)
# in channel-major layout, points on lanes; weights stay VMEM-resident across
# the point grid.  Coarse features enter each layer via their own weight slice
# (no concat).  The point dim is padded to a multiple of 128 for lane-dense
# output stores.
# ----------------------------------------------------------------------------
def _point_head_kernel(f_ref, c_ref, w1f_ref, w1c_ref, b1_ref,
                       w2h_ref, w2c_ref, b2_ref,
                       wph_ref, wpc_ref, bp_ref, o_ref):
    f = f_ref[0]                          # (Cf, T) bf16
    cc = c_ref[0]                         # (C,  T) bf16
    h1 = jnp.maximum(
        jnp.dot(w1f_ref[...], f, preferred_element_type=jnp.float32)
        + jnp.dot(w1c_ref[...], cc, preferred_element_type=jnp.float32)
        + b1_ref[...], 0.0)
    h2 = jnp.maximum(
        jnp.dot(w2h_ref[...], h1.astype(jnp.bfloat16),
                preferred_element_type=jnp.float32)
        + jnp.dot(w2c_ref[...], cc, preferred_element_type=jnp.float32)
        + b2_ref[...], 0.0)
    o_ref[0] = (
        jnp.dot(wph_ref[...], h2.astype(jnp.bfloat16),
                preferred_element_type=jnp.float32)
        + jnp.dot(wpc_ref[...], cc, preferred_element_type=jnp.float32)
        + bp_ref[...]
    )


def point_head(fine, coarse, params, *, tile_p=1024):
    """fine: (N, Cf, P), coarse: (N, C, P) -> point logits (N, C, P) float32."""
    n, cf, p = fine.shape
    c = coarse.shape[1]
    fc = params["w1f"].shape[1]
    ppad = max(128, ((p + 127) // 128) * 128)      # lane-dense output stores
    if ppad != p:
        fine = jnp.pad(fine, ((0, 0), (0, 0), (0, ppad - p)))
        coarse = jnp.pad(coarse, ((0, 0), (0, 0), (0, ppad - p)))
    tp = min(tile_p, ppad)
    grid = (n, pl.cdiv(ppad, tp))
    bf = jnp.bfloat16
    w1f_t = params["w1f"].T.astype(bf)    # (fc, Cf)
    w1c_t = params["w1c"].T.astype(bf)    # (fc, C)
    w2h_t = params["w2h"].T.astype(bf)    # (fc, fc)
    w2c_t = params["w2c"].T.astype(bf)    # (fc, C)
    wph_t = params["wph"].T.astype(bf)    # (C, fc)
    wpc_t = params["wpc"].T.astype(bf)    # (C, C)
    b1 = params["b1"].reshape(fc, 1).astype(jnp.float32)
    b2 = params["b2"].reshape(fc, 1).astype(jnp.float32)
    bp = params["bp"].reshape(c, 1).astype(jnp.float32)

    def const(shape):
        return pl.BlockSpec(shape, lambda i, j: (0, 0))

    out = pl.pallas_call(
        _point_head_kernel,
        out_shape=jax.ShapeDtypeStruct((n, c, ppad), jnp.float32),
        grid=grid,
        in_specs=[
            pl.BlockSpec((1, cf, tp), lambda i, j: (i, 0, j)),
            pl.BlockSpec((1, c, tp), lambda i, j: (i, 0, j)),
            const((fc, cf)), const((fc, c)), const((fc, 1)),
            const((fc, fc)), const((fc, c)), const((fc, 1)),
            const((c, fc)), const((c, c)), const((c, 1)),
        ],
        out_specs=pl.BlockSpec((1, c, tp), lambda i, j: (i, 0, j)),
        compiler_params=_cparams(2),
    )(fine.astype(bf), coarse.astype(bf),
      w1f_t, w1c_t, b1, w2h_t, w2c_t, b2, wph_t, wpc_t, bp)
    return out[:, :, :p]


# ----------------------------------------------------------------------------
# Pallas kernel 4: in-place scatter of refined point logits into the flat
# logit map (aliased input/output).  onehot (P, HWt) from a lane iota, the
# scattered values via a small matmul, unmodified positions pass through.
# ----------------------------------------------------------------------------
def _scatter_kernel(map_ref, idx_ref, val_ref, o_ref):
    p = idx_ref.shape[1]
    hwt = map_ref.shape[2]
    col0 = pl.program_id(1) * hwt
    pos = col0 + lax.broadcasted_iota(jnp.int32, (p, hwt), 1)    # (P, HWt)
    onehot = (idx_ref[0] == pos).astype(jnp.float32)             # (P, HWt)
    scattered = jnp.dot(val_ref[0], onehot,
                        preferred_element_type=jnp.float32)      # (C, HWt)
    covered = jnp.sum(onehot, axis=0, keepdims=True)             # (1, HWt)
    o_ref[0] = jnp.where(covered > 0.0, scattered, map_ref[0])


def scatter_points(logits, idx, vals, *, tile_hw=2048):
    """Equivalent of tensor.reshape(N,C,HW).scatter_(2, idx, vals), in place."""
    n, c, h, w = logits.shape
    hw = h * w
    p = idx.shape[1]
    flat = logits.reshape(n, c, hw)
    idx3 = idx.astype(jnp.int32).reshape(n, p, 1)
    t = hw if hw <= tile_hw else (tile_hw // 128) * 128
    grid = (n, pl.cdiv(hw, t))
    # TODO(synk): for very large P, replace the onehot matmul with per-point
    # DMA stores (memory_space=pl.ANY) to avoid the O(P*HW) compare/matmul.
    out = pl.pallas_call(
        _scatter_kernel,
        out_shape=jax.ShapeDtypeStruct((n, c, hw), jnp.float32),
        grid=grid,
        in_specs=[
            pl.BlockSpec((1, c, t), lambda i, j: (i, 0, j)),
            pl.BlockSpec((1, p, 1), lambda i, j: (i, 0, 0)),
            pl.BlockSpec((1, c, p), lambda i, j: (i, 0, 0)),
        ],
        out_specs=pl.BlockSpec((1, c, t), lambda i, j: (i, 0, j)),
        input_output_aliases={0: 0},
        compiler_params=_cparams(2),
    )(flat, idx3, vals.astype(jnp.float32))
    return out.reshape(n, c, h, w)


# ----------------------------------------------------------------------------
# JAX glue: grid_sample point sampling and top-k grid coords.
# ----------------------------------------------------------------------------
def point_sample(x, coords):
    """F.grid_sample(x, 2*coords-1, align_corners=False, padding_mode='zeros')."""
    # TODO(synk): bilinear gather at arbitrary points has no clean Pallas
    # equivalent (data-dependent lane gather); kept in JAX.
    n, c, h, w = x.shape
    gx = 2.0 * coords[..., 0] - 1.0
    gy = 2.0 * coords[..., 1] - 1.0
    fx = ((gx + 1.0) * w - 1.0) / 2.0
    fy = ((gy + 1.0) * h - 1.0) / 2.0
    x0 = jnp.floor(fx)
    y0 = jnp.floor(fy)
    wx = fx - x0
    wy = fy - y0
    x0i = x0.astype(jnp.int32)
    y0i = y0.astype(jnp.int32)
    x1i = x0i + 1
    y1i = y0i + 1

    def gather(yi, xi):
        valid = ((xi >= 0) & (xi < w) & (yi >= 0) & (yi < h)).astype(x.dtype)
        xc = jnp.clip(xi, 0, w - 1)
        yc = jnp.clip(yi, 0, h - 1)
        vals = jax.vmap(lambda img, yy, xx: img[:, yy, xx])(x, yc, xc)  # (N,C,P)
        return vals * valid[:, None, :]

    v00 = gather(y0i, x0i)
    v01 = gather(y0i, x1i)
    v10 = gather(y1i, x0i)
    v11 = gather(y1i, x1i)
    wx_ = wx[:, None, :]
    wy_ = wy[:, None, :]
    return (v00 * (1 - wy_) * (1 - wx_) + v01 * (1 - wy_) * wx_
            + v10 * wy_ * (1 - wx_) + v11 * wy_ * wx_)


def get_uncertain_point_coords_on_grid(uncertainty_map, num_points):
    """uncertainty_map: (N, 1, H, W) -> (indices (N, P), coords (N, P, 2))."""
    n = uncertainty_map.shape[0]
    h, w = uncertainty_map.shape[2], uncertainty_map.shape[3]
    num_points = min(h * w, num_points)
    flat = uncertainty_map.reshape(n, h * w)
    # TODO(synk): top-k index selection has no clean Pallas equivalent; JAX glue.
    _, idx = lax.top_k(flat, num_points)
    w_step = 1.0 / float(w)
    h_step = 1.0 / float(h)
    cx = w_step / 2.0 + (idx % w).astype(jnp.float32) * w_step
    cy = h_step / 2.0 + (idx // w).astype(jnp.float32) * h_step
    coords = jnp.stack([cx, cy], axis=-1)
    return idx, coords


# ----------------------------------------------------------------------------
# PointRendSemSegHead (inference forward)
# ----------------------------------------------------------------------------
def pointrend_semseg_forward(features, params, *, in_feature="p2",
                             subdivision_steps=2, subdivision_num_points=16,
                             upsample_row_tile=64):
    x = features[in_feature]                                      # (N, Cf, H, W)
    coarse_sem_seg_logits = coarse_head_conv1x1(
        x, params["coarse_w"], params["coarse_b"])                # (N, C, H, W)

    sem_seg_logits = coarse_sem_seg_logits
    for _ in range(subdivision_steps):
        sem_seg_logits, uncertainty_map = upsample2x_and_uncertainty(
            sem_seg_logits, row_tile=upsample_row_tile)
        point_indices, point_coords = get_uncertain_point_coords_on_grid(
            uncertainty_map, subdivision_num_points)
        fine_grained_features = point_sample(x, point_coords)                 # (N,Cf,P)
        coarse_features = point_sample(coarse_sem_seg_logits, point_coords)   # (N,C,P)
        point_logits = point_head(fine_grained_features, coarse_features,
                                  params)                                     # (N,C,P)
        sem_seg_logits = scatter_points(sem_seg_logits, point_indices,
                                        point_logits)
    return sem_seg_logits, {}


# ----------------------------------------------------------------------------
# Deterministic parameter init + demo run
# ----------------------------------------------------------------------------
def init_params(key, *, cf=8, num_classes=4, fc_dim=32):
    ks = jax.random.split(key, 12)

    def nrm(k, shape, scale=0.1):
        return scale * jax.random.normal(k, shape, jnp.float32)

    return {
        # coarse 1x1-conv head
        "coarse_w": nrm(ks[0], (cf, num_classes)),
        "coarse_b": nrm(ks[1], (num_classes,)),
        # StandardPointHead: 2 fc layers + predictor, coarse_pred_each_layer=True
        # (fc1 weight split into fine / coarse halves == concat formulation)
        "w1f": nrm(ks[2], (cf, fc_dim)),
        "w1c": nrm(ks[10], (num_classes, fc_dim)),
        "b1": nrm(ks[3], (fc_dim,)),
        "w2h": nrm(ks[4], (fc_dim, fc_dim)),
        "w2c": nrm(ks[5], (num_classes, fc_dim)),
        "b2": nrm(ks[6], (fc_dim,)),
        "wph": nrm(ks[7], (fc_dim, num_classes)),
        "wpc": nrm(ks[8], (num_classes, num_classes)),
        "bp": nrm(ks[9], (num_classes,)),
    }


if __name__ == "__main__":
    key = jax.random.PRNGKey(0)
    k_params, k_feat = jax.random.split(key)

    N, Cf, H, W = 2, 8, 16, 16
    NUM_CLASSES = 4

    params = init_params(k_params, cf=Cf, num_classes=NUM_CLASSES, fc_dim=32)
    features = {"p2": jax.random.normal(k_feat, (N, Cf, H, W), jnp.float32)}

    sem_seg_logits, _ = pointrend_semseg_forward(
        features, params, in_feature="p2",
        subdivision_steps=2, subdivision_num_points=16,
        upsample_row_tile=8)   # small row tile so the halo path is exercised
    sem_seg_logits = jax.block_until_ready(sem_seg_logits)

    assert sem_seg_logits.shape == (N, NUM_CLASSES, H * 4, W * 4)
    assert bool(jnp.all(jnp.isfinite(sem_seg_logits)))
    print("KERNEL_OK")
</pallas_src>

<mosaic_0001>
module attributes {stable_mosaic.version = 11 : i64} {
  func.func @_conv1x1_kernel(%arg0: i32, %arg1: i32, %arg2: memref<1x8x256xbf16, #tpu.memory_space<vmem>>, %arg3: memref<4x8xbf16, #tpu.memory_space<vmem>>, %arg4: memref<4x1xf32, #tpu.memory_space<vmem>>, %arg5: memref<1x4x256xf32, #tpu.memory_space<vmem>>) attributes {dimension_semantics = [#tpu.dimension_semantics<parallel>, #tpu.dimension_semantics<parallel>], iteration_bounds = array<i64: 2, 1>, scalar_prefetch = 0 : i64, scratch_operands = 0 : i64, tpu.core_type = #tpu.core_type<tc>, window_params = [{transform_indices = @transform_0, window_bounds = array<i64: 1, 8, 256>}, {pipeline_mode = #tpu.pipeline_mode<synchronous>, transform_indices = @transform_1, window_bounds = array<i64: 4, 8>}, {pipeline_mode = #tpu.pipeline_mode<synchronous>, transform_indices = @transform_2, window_bounds = array<i64: 4, 1>}, {transform_indices = @transform_3, window_bounds = array<i64: 1, 4, 256>}]} {
    %c0 = arith.constant 0 : index
    %c0_0 = arith.constant 0 : index
    %0 = vector.load %arg3[%c0, %c0_0] : memref<4x8xbf16, #tpu.memory_space<vmem>>, vector<4x8xbf16>
    %c0_1 = arith.constant 0 : index
    %c0_2 = arith.constant 0 : index
    %c0_3 = arith.constant 0 : index
    %1 = vector.load %arg2[%c0_1, %c0_2, %c0_3] : memref<1x8x256xbf16, #tpu.memory_space<vmem>>, vector<1x8x256xbf16>
    %2 = vector.shape_cast %1 : vector<1x8x256xbf16> to vector<8x256xbf16>
    %cst = arith.constant dense<0.000000e+00> : vector<4x256xf32>
    %3 = tpu.matmul %0, %2, %cst {dimension_numbers = #tpu.dot_dimension_numbers<[1], [0], [0], [1], [0, 0, 1, 1], [], []>} : vector<4x8xbf16>, vector<8x256xbf16>, vector<4x256xf32> -> vector<4x256xf32>
    %c0_4 = arith.constant 0 : index
    %c0_5 = arith.constant 0 : index
    %4 = vector.load %arg4[%c0_4, %c0_5] : memref<4x1xf32, #tpu.memory_space<vmem>>, vector<4x1xf32>
    %5 = vector.broadcast %4 : vector<4x1xf32> to vector<4x256xf32>
    %6 = arith.addf %3, %5 : vector<4x256xf32>
    %c0_6 = arith.constant 0 : index
    %c0_7 = arith.constant 0 : index
    %c0_8 = arith.constant 0 : index
    %7 = vector.load %arg5[%c0_6, %c0_7, %c0_8] : memref<1x4x256xf32, #tpu.memory_space<vmem>>, vector<1x4x256xf32>
    %8 = vector.shape_cast %7 : vector<1x4x256xf32> to vector<4x256xf32>
    %9 = vector.shape_cast %6 : vector<4x256xf32> to vector<1x4x256xf32>
    tpu.vector_store %arg5[%c0_6, %c0_7, %c0_8], %9 {strides = array<i32>} : memref<1x4x256xf32, #tpu.memory_space<vmem>>, vector<1x4x256xf32>,
    return
  }
  func.func @transform_0(%arg0: i32, %arg1: i32) -> (i32, i32, i32) {
    %c0_i32 = arith.constant 0 : i32
    %c0_i32_0 = arith.constant 0 : i32
    return %arg0, %c0_i32, %arg1 : i32, i32, i32
  }
  func.func @transform_1(%arg0: i32, %arg1: i32) -> (i32, i32) {
    %c0_i32 = arith.constant 0 : i32
    %c0_i32_0 = arith.constant 0 : i32
    %c0_i32_1 = arith.constant 0 : i32
    return %c0_i32, %c0_i32_0 : i32, i32
  }
  func.func @transform_2(%arg0: i32, %arg1: i32) -> (i32, i32) {
    %c0_i32 = arith.constant 0 : i32
    %c0_i32_0 = arith.constant 0 : i32
    %c0_i32_1 = arith.constant 0 : i32
    return %c0_i32, %c0_i32_0 : i32, i32
  }
  func.func @transform_3(%arg0: i32, %arg1: i32) -> (i32, i32, i32) {
    %c0_i32 = arith.constant 0 : i32
    %c0_i32_0 = arith.constant 0 : i32
    return %arg0, %c0_i32, %arg1 : i32, i32, i32
  }
}

</mosaic_0001>

<bundles_post_ra>
// kernel: tpu_custom_call.1
= control target key start
LH: loop header
LB: loop body
LE: loop exit
PB: predicated region body
PF: predicated region fallthrough
CT: control target
= control target key end

     0   :  { %8 = vsyncpa [#allocation3], 0  ;;  %s781_s0 = inlined_call_operand.hbm [shape: bf16[2,8,256], index: 0, kind: input, shape index: {}]   ;;  %s782_s1 = inlined_call_operand.vmem [shape: bf16[4,8], index: 1, kind: input, shape index: {}]   ;;  %s783_s2 = inlined_call_operand.vmem [shape: f32[4,1], index: 2, kind: input, shape index: {}]   ;;  %s784_s3 = inlined_call_operand.hbm [shape: f32[2,4,256], index: 3, kind: output, shape index: {}]  }
   0x1   :  { %10 = vsyncpa [#allocation3 + $0x1], 0 }
   0x2   :  { %11 = vsyncpa [#allocation4], 0 }
   0x3   :  { %13 = vsyncpa [#allocation4 + $0x1], 0  ;;  %s603_s12 = smov 0   ;;  %s605_s13 = smov 0  }
   0x4   :  { %s607_s14 = smov 0   ;;  %s609_s15 = smov 0  }
   0x5   :  { %s611_s16 = smov 0   ;;  %s613_s17 = smov 0  }
   0x6 LB: > { %s379_s18 = sadd.s32 4294967295, %s578_s17   ;;  %s380_s19 = sadd.s32 4294967294, %s578_s17   ;;  %s578_s17 = sphi %s613_s17, %s19_s17   ;;  %s574_s16 = sphi %s611_s16, %s800_s16   ;;  %s570_s15 = sphi %s609_s15, %s799_s15   ;;  %s566_s14 = sphi %s607_s14, %s798_s14   ;;  %s562_s13 = sphi %s605_s13, %s797_s13   ;;  %s558_s12 = sphi %s603_s12, %s796_s12  }
   0x7   : > { %s31_s20 = sadd.s32 1, %s574_s16  ;;  %s40_s21 = sadd.s32 1, %s566_s14 }
   0x8   : > { %p33_p0 = scmp.ge.s32.totalorder %s31_s20, 2  ;;  %p47_p1 = scmp.ne.s32.totalorder %s566_s14, %s562_s13 }
   0x9   : > { %p48_p2 = scmp.eq.s32.totalorder %s578_s17, 0  ;;  %p53_p3 = scmp.ne.s32.totalorder %s562_s13, %s558_s12 }
   0xa   : > { %s802_s20 = smov (%p33_p0, %s31_s20), 0  ;;  %p54_p5 = scmp.eq.s32.totalorder %s379_s18, 0 }
   0xb   : > { %p644_p4 = por %p48_p2, %p47_p1  ;;  %s35_s23 = ssub.s32 %s574_s16, %s802_s20 }
   0xc   : > { %p121_p6 = scmp.eq.s32.totalorder %s379_s18, 1  ;;  %p38_p7 = scmp.eq.s32.totalorder %s35_s23, 0 }
   0xd   : > { %p650_p8 = por %p54_p5, %p53_p3  ;;  %p127_p10 = scmp.eq.s32.totalorder %s380_s19, 1 }
   0xe   : > { %p654_p9 = por %p121_p6, %p47_p1  ;;  %p412_p13 = scmp.lt.s32.totalorder %s578_s17, 2 }
   0xf   : > { %s659_s26 = scalar_select %p38_p7, %s566_s14, %s40_s21  }
  0x10   : > { %s788_s25 = scalar_select %p654_p9, 1, 0 }
  0x11   : > { %p661_p11 = por %p127_p10, %p53_p3  ;;  %s153_s28 = sand.u32 1, %s566_s14  }
  0x12   : > { %s383_s29 = sshll.u32 %s153_s28, 3  ;;  %s398_s30 = sshll.u32 %s574_s16, 7 }
  0x13   : > { %s789_s27 = scalar_select %p661_p11, 1, 0 }
  0x14   : > { %s672_s6 = scalar_lea.hbm %s781_s0, %s398_s30  ;;  %s157_s7 = scalar_lea.vmem [#allocation2], %s383_s29 }
  0x15   : > { %s167_s8 = sshll.u32 %s157_s7, 4  ;;  %p678_p0 = pnand %p412_p13, %p644_p4  ;;  %s674_s8 = int_to_ptr.vmem [resolvable:$true] %s167_s8 }
  0x16   : > { %s154_s10 = scalar_lea.sflag [#allocation3], %s153_s28  ;;  %s466_s11 = scalar_lea.hbm %s672_s6, 128 }
  0x17   : > { %p467_p3 = scmp.ne.s32.totalorder %s672_s6, %s466_s11  ;;  %p468_p5 = pneg %p678_p0 }
  0x18   : > { %s471_s21 = scalar_lea.hbm %s781_s0, 256  ;;  %p472_p4 = scmp.lt.u32.totalorder %s672_s6, %s781_s0 }
  0x19   : > { %p469_p6 = pnand %p468_p5, %p467_p3  ;;  %p473_p10 = scmp.lt.u32.totalorder %s471_s21, %s466_s11 }
  0x1a   : > { %p475_p12 = scmp.lt.u32.totalorder %s466_s11, %s672_s6 }
  0x1b   : > { %p470_p7 = pneg %p469_p6  ;;  %p474_p13 = por %p473_p10, %p472_p4 }
  0x1d   : > { %p476_p1 = por %p475_p12, %p474_p13 }
  0x1f   : > { %p477_p2 = pnand %p476_p1, %p470_p7 }
  0x21   : > { %480 = shalt.err (!%p477_p2)
}
  0x22   : > { %s481_s28 = scalar_lea.vmem %s674_s8, 128  ;;  %s580_s29 = smov [#allocation2]  }
  0x23   : > { %p482_p3 = scmp.ne.s32.totalorder %s674_s8, %s481_s28  ;;  %s486_s30 = sshll.u32 %s580_s29, 4  ;;  %s487_s30 = int_to_ptr.vmem [resolvable:$false] %s486_s30 }
  0x24   : > { %s488_s4 = scalar_lea.vmem %s487_s30, 256  ;;  %p489_p9 = scmp.lt.s32.totalorder %s674_s8, %s487_s30 }
  0x25   : > { %p484_p6 = pnand %p482_p3, %p468_p5  ;;  %p490_p4 = scmp.lt.s32.totalorder %s488_s4, %s481_s28 }
  0x27   : > { %p485_p11 = pneg %p484_p6  ;;  %p491_p10 = por %p490_p4, %p489_p9 }
  0x29   : > { %p492_p12 = pnand %p491_p10, %p485_p11 }
  0x2b   : > { %495 = shalt.err (!%p492_p12)
}
  0x2c   : > { %407 = dma.hbm_to_vmem [thread:$0]  (!%p678_p0), %s672_s6, 128, %s674_s8, %s154_s10  }
  0x2d   : > { %p791_p1 = scmp.lt.s32.totalorder %s578_s17, 3  ;;  %p792_p2 = scmp.ge.s32.totalorder %s578_s17, 1 }
  0x2f   : > { %p173_p5 = pnand %p792_p2, %p791_p1 }
  0x30   : > { %s714_s5 = sand.u32 (!%p173_p5), 1, %s562_s13  }
  0x31   : > { %176 = sbr.rel (%p173_p5) target bundleno = 295 (0x127), region = 32  ;;  %s387_s7 = sshll.u32 (!%p173_p5), %s714_s5, 3 }
  0x32   : > { %s179_s11 = scalar_lea.sflag (!%p173_p5), [#allocation3], %s714_s5  ;;  %s182_s18 = scalar_lea.vmem (!%p173_p5), [#allocation2], %s387_s7 }
  0x38   : > { %549 = dma.done.wait (%p650_p8), %s179_s11, 128  }
  0x39   : > { %551 = vsyncadd (%p650_p8), %s179_s11, 4294967168  ;;  %v581_v0 = vmov 0   ;;  %v209_v1 = vld [vmem:[%s182_s18] sm:$0xff]  ;;  %vm225_vm0 = vcmask 1043456   ;;  %vm221_vm1 = vcmask 64512   ;;  %s399_s24 = sshll.u32 %s570_s15, 7 }
  0x3a   : > { %264 = vmatprep.mubr.bf16.mxu0 %v581_v0  ;;  %463 = vset.pattern.permute.xlu0 %v581_v0  ;;  %v210_v2 = vld [vmem:[%s783_s2] sm:$0xf]  ;;  %v390_v3 = vcombine.high %v209_v1, %v209_v1  ;;  %v389_v4 = vcombine.low %v209_v1, %v209_v1  ;;  %s204_s19 = scalar_lea.vmem [#allocation5], %s387_s7  ;;  %s732_s28 = scalar_lea.hbm %s784_s3, %s399_s24 }
  0x3b   : > { %213 = vperm.xlu0 %463, %v210_v2   ;;  %v208_v6 = vld [vmem:[%s782_s1] sm:$0x3]  ;;  %s295_s21 = sshll.u32 %s204_s19, 4  ;;  %s279_s29 = scalar_lea.sflag [#allocation4], %s714_s5  ;;  %s734_s21 = int_to_ptr.vmem [resolvable:$true] %s295_s21 }
  0x3c   : > { %391 = vmatprep.subr.msk.bf16.mxu0 %vm225_vm0, %v390_v3  ;;  %v227_v5 = vsel %vm225_vm0, %v389_v4, 0  ;;  %s496_s30 = scalar_lea.vmem %s734_s21, 128  ;;  %p793_p9 = scmp.ne.s32.totalorder %s788_s25, 0 }
  0x3d   : > { %233 = vmatpush1.bf16.msra.mxu0 %v227_v5  ;;  %p497_p8 = scmp.ne.s32.totalorder %s734_s21, %s496_s30  ;;  %s582_s15 = smov [#allocation5]  }
  0x3e   : > { %s500_s4 = sshll.u32 %s582_s15, 4  ;;  %s501_s4 = int_to_ptr.vmem [resolvable:$false] %s500_s4 }
  0x3f   : > { %p498_p11 = pnand %p497_p8, %p793_p9  ;;  %s502_s7 = scalar_lea.vmem %s501_s4, 256 }
  0x40   : > { %392 = vmatmul.mubr.msk.bf16.vlgmr.msra.gmra.mrb[0].mxu0 %vm221_vm1, %v208_v6  ;;  %p503_p7 = scmp.lt.s32.totalorder %s734_s21, %s501_s4  ;;  %p504_p13 = scmp.lt.s32.totalorder %s502_s7, %s496_s30 }
  0x41   : > { %p499_p0 = pneg %p498_p11 }
  0x42   : > { %p505_p3 = por %p504_p13, %p503_p7 }
  0x44   : > { %p506_p6 = pnand %p505_p3, %p499_p0 }
  0xba   : > { %v214_v7 = vpop.permute.xlu0 %213 }
 0x113   : > { %v266_v8 = vpop.f32.mrb[0].mxu0 }
 0x114   : > { %v267_v9 = vadd.f32 %v266_v8, %v214_v7  ;;  %v268_v10 = vpop.f32.mrb[1].mxu0 }
 0x115   : > { %v269_v11 = vadd.f32 %v268_v10, %v214_v7  ;;  %v270_v12 = vpop.f32.mrb[2].mxu0 }
 0x116   : > { %v271_v13 = vpop.f32.mrb[3].mxu0 }
 0x117   : > { %v275_v14 = vcombine.low %v267_v9, %v269_v11 }
 0x119   : > { %277 = vst [vmem:[%s204_s19] sm:$0xff] %v275_v14 }
 0x11a   : > { %509 = shalt.err (!%p506_p6)
}
 0x11b   : > { %s510_s5 = scalar_lea.hbm %s732_s28, 128  ;;  %s514_s6 = scalar_lea.hbm %s784_s3, 256 }
 0x11c   : > { %p511_p4 = scmp.ne.s32.totalorder %s732_s28, %s510_s5  ;;  %p515_p1 = scmp.lt.u32.totalorder %s732_s28, %s784_s3 }
 0x11d   : > { %p516_p2 = scmp.lt.u32.totalorder %s514_s6, %s510_s5  ;;  %p518_p8 = scmp.lt.u32.totalorder %s510_s5, %s732_s28 }
 0x11e   : > { %p512_p10 = pnand %p511_p4, %p793_p9 }
 0x11f   : > { %p517_p5 = por %p516_p2, %p515_p1 }
 0x120   : > { %p513_p12 = pneg %p512_p10 }
 0x121   : > { %p519_p11 = por %p518_p8, %p517_p5 }
 0x123   : > { %p520_p0 = pnand %p519_p11, %p513_p12 }
 0x125   : > { %523 = shalt.err (!%p520_p0)
}
 0x126   : > { %402 = dma.vmem_to_hbm [thread:$0]  (%p793_p9), %s734_s21, 128, %s732_s28, %s279_s29  }
 0x127 PF: > { %s307_s10 = sand.u32 1, %s558_s12   ;;  %p794_p7 = scmp.ne.s32.totalorder %s789_s27, 0 }
 0x128   : > { %p795_p13 = scmp.ge.s32.totalorder %s578_s17, 2  ;;  %s308_s24 = scalar_lea.sflag [#allocation4], %s307_s10 }
 0x12a   : > { %p409_p3 = pnand %p795_p13, %p794_p7 }
 0x12c   : > { %553 = dma.done.wait (!%p409_p3), %s308_s24, 128  }
 0x12d   : > { %555 = vsyncadd (!%p409_p3), %s308_s24, 4294967168  ;;  %s19_s17 = sadd.s32 1, %s578_s17   ;;  %s796_s12 = smov %s562_s13 }
 0x12e   : > { %p16_p6 = scmp.ge.s32.totalorder %s19_s17, 4   ;;  %s797_s13 = smov %s566_s14 }
 0x12f   : > { %s798_s14 = smov %s659_s26  ;;  %s799_s15 = smov %s574_s16 }
 0x130   : > { %s800_s16 = smov %s802_s20  ;;  %18 = sbr.rel (!%p16_p6) target bundleno = 6 (0x6), region = 77 }
 0x137   :  { %313 = vsyncpa [#allocation3], 1 }
 0x138   :  { %315 = vsyncpa [#allocation3 + $0x1], 1 }
 0x139   :  { %316 = vsyncpa [#allocation4], 1 }
 0x13a   :  { %318 = vsyncpa [#allocation4 + $0x1], 1 }

</bundles_post_ra>
